<compile_context>
chip_gen: v5e
topology: v5e:2x2
jax: 0.10.0
libtpu: 0.0.40
codegen_flags: <defaults>
</compile_context>

<pallas_src>
import jax
import jax.numpy as jnp
from jax.experimental import pallas as pl
from jax.experimental.pallas import tpu as pltpu

NUM_ENTITY_TYPES = 12
PARAM_INPUT_DIM = 45
FEATURE_DIM = 1 + PARAM_INPUT_DIM  # 46


def _geom_embedding_kernel(feat_ref, pos_ref, emb_ref, wfeat_ref, wq_ref,
                           out_ref):
    feat = feat_ref[...]                                        # (tm, 46) f32

    # Entity type: truncate like torch .long(), clamp to [0, 11], then gather
    # via one-hot @ table on the MXU. The table already carries b_param+b_pos.
    t = jnp.clip(feat[:, 0:1].astype(jnp.int32), 0, NUM_ENTITY_TYPES - 1)
    ids = jax.lax.broadcasted_iota(jnp.int32,
                                   (feat.shape[0], NUM_ENTITY_TYPES), 1)
    onehot = (t == ids).astype(jnp.float32)                     # (tm, 12)
    acc = jnp.dot(onehot, emb_ref[...],
                  preferred_element_type=jnp.float32)           # (tm, d)

    # Param Linear: wfeat row 0 is zero so only columns 1..45 contribute.
    # Zero the type column first so a non-finite type id cannot poison the row.
    col = jax.lax.broadcasted_iota(jnp.int32, feat.shape, 1)
    feat_p = jnp.where(col == 0, 0.0, feat)                     # (tm, 46)
    acc = acc + jnp.dot(feat_p, wfeat_ref[...],
                        preferred_element_type=jnp.float32)

    # Pos Linear (K=2) on the VPU: two broadcast FMAs beat an MXU fill/drain.
    pos = pos_ref[...]                                          # (tm, 2)
    wq = wq_ref[...]                                            # (2, d)
    acc = acc + pos[:, 0:1] * wq[0:1, :] + pos[:, 1:2] * wq[1:2, :]

    out_ref[...] = acc.astype(out_ref.dtype)


def _round_up(x, m):
    return (x + m - 1) // m * m


def _default_vmem_limit_bytes():
    # Size against the actual chip (v5e/v6e: 128 MiB, v7x: 64 MiB per TC).
    try:
        cap = int(pltpu.get_tpu_info().vmem_capacity_bytes)
    except Exception:
        cap = 64 * 1024 * 1024          # assume the smallest (v7x)
    # Leave headroom for Mosaic internal scratch / constants.
    return max(16 * 1024 * 1024, min(cap * 3 // 4, 100 * 1024 * 1024))


def geom_embedding(features, pos2d, params, *, tile_rows=None,
                   out_dtype=jnp.float32, vmem_limit_bytes=None):
    """features: (B, N, 46), pos2d: (B, N, 2) -> (B, N, d_model)."""
    B, N, F = features.shape
    assert F == FEATURE_DIM, f"expected last feature dim {FEATURE_DIM}, got {F}"

    emb = params["emb_table"].astype(jnp.float32)               # (12, d)
    wp_t = params["wp_t"].astype(jnp.float32)                   # (45, d)
    wq_t = params["wq_t"].astype(jnp.float32)                   # (2, d)
    bias = (params["bp"] + params["bq"]).astype(jnp.float32)    # (1, d)
    d_model = emb.shape[1]

    # Fold the fused bias into the embedding table (exact: one-hot rows sum to 1).
    emb_b = emb + bias                                          # (12, d)
    # Param weight with a zero row for the (masked) type column -> (46, d).
    w_feat = jnp.concatenate([jnp.zeros((1, d_model), jnp.float32), wp_t],
                             axis=0)

    M = B * N
    feat2d = features.reshape(M, F).astype(jnp.float32)
    pos_2d = pos2d.reshape(M, 2).astype(jnp.float32)

    if vmem_limit_bytes is None:
        vmem_limit_bytes = _default_vmem_limit_bytes()
    vmem_limit_bytes = int(vmem_limit_bytes)

    out_itemsize = jnp.dtype(out_dtype).itemsize
    if tile_rows is None:
        # Real pipelined footprint: 2 buffers for every streamed operand.
        per_row_bytes = 2 * (4 * (F + 2) + out_itemsize * d_model)
        budget = (6 * vmem_limit_bytes) // 10
        tile_rows = budget // per_row_bytes
        tile_rows = min(tile_rows, 8192)
        # Keep >= ~4 grid steps (>=2 per v7x TensorCore); v5e/v6e don't mind.
        tile_rows = min(tile_rows, max(8, _round_up(pl.cdiv(M, 4), 8)))
    tile_rows = max(8, (int(tile_rows) // 8) * 8)
    tile_rows = min(tile_rows, _round_up(M, 8))

    grid = (pl.cdiv(M, tile_rows),)                             # ragged last block OK

    def row_spec(cols):
        return pl.BlockSpec((tile_rows, cols), lambda i: (i, 0))

    def const_spec(rows):
        return pl.BlockSpec((rows, d_model), lambda i: (0, 0))

    out = pl.pallas_call(
        _geom_embedding_kernel,
        out_shape=jax.ShapeDtypeStruct((M, d_model), out_dtype),
        grid_spec=pltpu.PrefetchScalarGridSpec(
            num_scalar_prefetch=0,
            grid=grid,
            in_specs=[
                row_spec(F),                      # raw (M, 46) features
                row_spec(2),                      # (M, 2) pos2d
                const_spec(NUM_ENTITY_TYPES),     # embedding table (+ fused bias)
                const_spec(F),                    # [0 ; W_param^T]
                const_spec(2),                    # W_pos^T
            ],
            out_specs=row_spec(d_model),
        ),
        compiler_params=pltpu.CompilerParams(
            dimension_semantics=("parallel",),
            vmem_limit_bytes=vmem_limit_bytes),
    )(feat2d, pos_2d, emb_b, w_feat, wq_t)

    return out.reshape(B, N, d_model)


def init_params(key, d_model):
    """Deterministic synthetic parameters (shapes match the PyTorch module)."""
    k1, k2, k3, k4, k5 = jax.random.split(key, 5)
    emb_table = jax.random.normal(k1, (NUM_ENTITY_TYPES, d_model), jnp.float32)
    # PyTorch Linear stores weight as (out, in); we keep the transposed (in, out)
    wp_t = jax.random.normal(k2, (PARAM_INPUT_DIM, d_model), jnp.float32) * 0.1
    bp = jax.random.normal(k3, (1, d_model), jnp.float32) * 0.1
    wq_t = jax.random.normal(k4, (2, d_model), jnp.float32) * 0.1
    bq = jax.random.normal(k5, (1, d_model), jnp.float32) * 0.1
    return dict(emb_table=emb_table, wp_t=wp_t, bp=bp, wq_t=wq_t, bq=bq)


def reference(features, pos2d, params):
    """Pure-JAX reference for verification."""
    idx = jnp.clip(features[:, :, 0].astype(jnp.int32), 0, NUM_ENTITY_TYPES - 1)
    e_type = params["emb_table"][idx]
    e_param = features[:, :, 1:] @ params["wp_t"] + params["bp"][0]
    e_pos = pos2d @ params["wq_t"] + params["bq"][0]
    return e_type + e_param + e_pos


if __name__ == "__main__":
    d_model = 32
    key = jax.random.PRNGKey(0)
    kparams, kdata = jax.random.split(key)
    params = init_params(kparams, d_model)

    # (2, 13) -> M=26 exercises the ragged last block (no wrapper pad);
    # (4, 64) -> M=256 exercises a multi-step grid with resident constants.
    for (B, N) in [(2, 8), (2, 13), (4, 64)]:
        kf, kt, kp, kdata = jax.random.split(kdata, 4)
        # features[:, :, 0] is the (float-encoded) entity type id; rest are params
        ftype = jax.random.randint(kt, (B, N, 1), -2, 20).astype(jnp.float32)
        fparams = jax.random.normal(kf, (B, N, PARAM_INPUT_DIM), jnp.float32)
        features = jnp.concatenate([ftype, fparams], axis=-1)       # (B, N, 46)
        pos2d = jax.random.normal(kp, (B, N, 2), jnp.float32)       # (B, N, 2)

        out = jax.block_until_ready(geom_embedding(features, pos2d, params))
        ref = reference(features, pos2d, params)
        assert out.shape == (B, N, d_model)
        assert jnp.allclose(out, ref, atol=1e-5, rtol=1e-5), \
            f"mismatch vs reference for {(B, N)}"

    print("KERNEL_OK")
</pallas_src>

<mosaic_0001>
module attributes {stable_mosaic.version = 11 : i64} {
  func.func @_geom_embedding_kernel(%arg0: i32, %arg1: memref<8x46xf32, #tpu.memory_space<vmem>>, %arg2: memref<8x2xf32, #tpu.memory_space<vmem>>, %arg3: memref<12x32xf32, #tpu.memory_space<vmem>>, %arg4: memref<46x32xf32, #tpu.memory_space<vmem>>, %arg5: memref<2x32xf32, #tpu.memory_space<vmem>>, %arg6: memref<8x32xf32, #tpu.memory_space<vmem>>) attributes {dimension_semantics = [#tpu.dimension_semantics<parallel>], iteration_bounds = array<i64: 2>, scalar_prefetch = 0 : i64, scratch_operands = 0 : i64, tpu.core_type = #tpu.core_type<tc>, window_params = [{transform_indices = @transform_0, window_bounds = array<i64: 8, 46>}, {transform_indices = @transform_1, window_bounds = array<i64: 8, 2>}, {pipeline_mode = #tpu.pipeline_mode<synchronous>, transform_indices = @transform_2, window_bounds = array<i64: 12, 32>}, {pipeline_mode = #tpu.pipeline_mode<synchronous>, transform_indices = @transform_3, window_bounds = array<i64: 46, 32>}, {pipeline_mode = #tpu.pipeline_mode<synchronous>, transform_indices = @transform_4, window_bounds = array<i64: 2, 32>}, {transform_indices = @transform_5, window_bounds = array<i64: 8, 32>}]} {
    %c0 = arith.constant 0 : index
    %c0_0 = arith.constant 0 : index
    %0 = vector.load %arg1[%c0, %c0_0] : memref<8x46xf32, #tpu.memory_space<vmem>>, vector<8x46xf32>
    %1 = vector.extract_strided_slice %0 {offsets = [0, 0], sizes = [8, 1], strides = [1, 1]} : vector<8x46xf32> to vector<8x1xf32>
    %2 = arith.fptosi %1 : vector<8x1xf32> to vector<8x1xi32>
    %c0_i32 = arith.constant 0 : i32
    %c11_i32 = arith.constant 11 : i32
    %3 = vector.broadcast %c0_i32 : i32 to vector<8x1xi32>
    %4 = arith.maxsi %3, %2 : vector<8x1xi32>
    %5 = vector.broadcast %c11_i32 : i32 to vector<8x1xi32>
    %6 = arith.minsi %5, %4 : vector<8x1xi32>
    %7 = tpu.iota {dimensions = array<i32: 1>} : vector<8x12xi32>
    %8 = vector.broadcast %6 : vector<8x1xi32> to vector<8x12xi32>
    %9 = arith.cmpi eq, %8, %7 : vector<8x12xi32>
    %10 = arith.extui %9 : vector<8x12xi1> to vector<8x12xi32>
    %11 = arith.sitofp %10 : vector<8x12xi32> to vector<8x12xf32>
    %c0_1 = arith.constant 0 : index
    %c0_2 = arith.constant 0 : index
    %12 = vector.load %arg3[%c0_1, %c0_2] : memref<12x32xf32, #tpu.memory_space<vmem>>, vector<12x32xf32>
    %cst = arith.constant dense<0.000000e+00> : vector<8x32xf32>
    %13 = tpu.matmul %11, %12, %cst {dimension_numbers = #tpu.dot_dimension_numbers<[1], [0], [0], [1], [0, 0, 1, 1], [], []>} : vector<8x12xf32>, vector<12x32xf32>, vector<8x32xf32> -> vector<8x32xf32>
    %14 = tpu.iota {dimensions = array<i32: 1>} : vector<8x46xi32>
    %c0_i32_3 = arith.constant 0 : i32
    %15 = vector.broadcast %c0_i32_3 : i32 to vector<8x46xi32>
    %16 = arith.cmpi eq, %14, %15 : vector<8x46xi32>
    %cst_4 = arith.constant 0.000000e+00 : f32
    %17 = vector.broadcast %cst_4 : f32 to vector<8x46xf32>
    %18 = arith.select %16, %17, %0 : vector<8x46xi1>, vector<8x46xf32>
    %c0_5 = arith.constant 0 : index
    %c0_6 = arith.constant 0 : index
    %19 = vector.load %arg4[%c0_5, %c0_6] : memref<46x32xf32, #tpu.memory_space<vmem>>, vector<46x32xf32>
    %cst_7 = arith.constant dense<0.000000e+00> : vector<8x32xf32>
    %20 = tpu.matmul %18, %19, %cst_7 {dimension_numbers = #tpu.dot_dimension_numbers<[1], [0], [0], [1], [0, 0, 1, 1], [], []>} : vector<8x46xf32>, vector<46x32xf32>, vector<8x32xf32> -> vector<8x32xf32>
    %21 = arith.addf %13, %20 : vector<8x32xf32>
    %c0_8 = arith.constant 0 : index
    %c0_9 = arith.constant 0 : index
    %22 = vector.load %arg2[%c0_8, %c0_9] : memref<8x2xf32, #tpu.memory_space<vmem>>, vector<8x2xf32>
    %c0_10 = arith.constant 0 : index
    %c0_11 = arith.constant 0 : index
    %23 = vector.load %arg5[%c0_10, %c0_11] : memref<2x32xf32, #tpu.memory_space<vmem>>, vector<2x32xf32>
    %24 = vector.extract_strided_slice %22 {offsets = [0, 0], sizes = [8, 1], strides = [1, 1]} : vector<8x2xf32> to vector<8x1xf32>
    %25 = vector.extract_strided_slice %23 {offsets = [0, 0], sizes = [1, 32], strides = [1, 1]} : vector<2x32xf32> to vector<1x32xf32>
    %26 = vector.broadcast %24 : vector<8x1xf32> to vector<8x32xf32>
    %27 = vector.broadcast %25 : vector<1x32xf32> to vector<8x32xf32>
    %28 = arith.mulf %26, %27 : vector<8x32xf32>
    %29 = arith.addf %21, %28 : vector<8x32xf32>
    %30 = vector.extract_strided_slice %22 {offsets = [0, 1], sizes = [8, 1], strides = [1, 1]} : vector<8x2xf32> to vector<8x1xf32>
    %31 = vector.extract_strided_slice %23 {offsets = [1, 0], sizes = [1, 32], strides = [1, 1]} : vector<2x32xf32> to vector<1x32xf32>
    %32 = vector.broadcast %30 : vector<8x1xf32> to vector<8x32xf32>
    %33 = vector.broadcast %31 : vector<1x32xf32> to vector<8x32xf32>
    %34 = arith.mulf %32, %33 : vector<8x32xf32>
    %35 = arith.addf %29, %34 : vector<8x32xf32>
    %c0_12 = arith.constant 0 : index
    %c0_13 = arith.constant 0 : index
    %36 = vector.load %arg6[%c0_12, %c0_13] : memref<8x32xf32, #tpu.memory_space<vmem>>, vector<8x32xf32>
    tpu.vector_store %arg6[%c0_12, %c0_13], %35 {strides = array<i32>} : memref<8x32xf32, #tpu.memory_space<vmem>>, vector<8x32xf32>,
    return
  }
  func.func @transform_0(%arg0: i32) -> (i32, i32) {
    %c0_i32 = arith.constant 0 : i32
    %c0_i32_0 = arith.constant 0 : i32
    return %arg0, %c0_i32 : i32, i32
  }
  func.func @transform_1(%arg0: i32) -> (i32, i32) {
    %c0_i32 = arith.constant 0 : i32
    %c0_i32_0 = arith.constant 0 : i32
    return %arg0, %c0_i32 : i32, i32
  }
  func.func @transform_2(%arg0: i32) -> (i32, i32) {
    %c0_i32 = arith.constant 0 : i32
    %c0_i32_0 = arith.constant 0 : i32
    %c0_i32_1 = arith.constant 0 : i32
    return %c0_i32, %c0_i32_0 : i32, i32
  }
  func.func @transform_3(%arg0: i32) -> (i32, i32) {
    %c0_i32 = arith.constant 0 : i32
    %c0_i32_0 = arith.constant 0 : i32
    %c0_i32_1 = arith.constant 0 : i32
    return %c0_i32, %c0_i32_0 : i32, i32
  }
  func.func @transform_4(%arg0: i32) -> (i32, i32) {
    %c0_i32 = arith.constant 0 : i32
    %c0_i32_0 = arith.constant 0 : i32
    %c0_i32_1 = arith.constant 0 : i32
    return %c0_i32, %c0_i32_0 : i32, i32
  }
  func.func @transform_5(%arg0: i32) -> (i32, i32) {
    %c0_i32 = arith.constant 0 : i32
    %c0_i32_0 = arith.constant 0 : i32
    return %arg0, %c0_i32 : i32, i32
  }
}

</mosaic_0001>

<bundles_post_ra>
// kernel: tpu_custom_call.1
= control target key start
LH: loop header
LB: loop body
LE: loop exit
PB: predicated region body
PF: predicated region fallthrough
CT: control target
= control target key end

     0   :  { %10 = vsyncpa [#allocation3], 0  ;;  %s701_s0 = inlined_call_operand.vmem [shape: f32[16,46], index: 0, kind: input, shape index: {}]   ;;  %s702_s1 = inlined_call_operand.vmem [shape: f32[16,2], index: 1, kind: input, shape index: {}]   ;;  %s703_s2 = inlined_call_operand.vmem [shape: f32[12,32], index: 2, kind: input, shape index: {}]   ;;  %s704_s3 = inlined_call_operand.vmem [shape: f32[46,32], index: 3, kind: input, shape index: {}]   ;;  %s705_s4 = inlined_call_operand.vmem [shape: f32[2,32], index: 4, kind: input, shape index: {}]   ;;  %s706_s5 = inlined_call_operand.hbm [shape: f32[16,32], index: 5, kind: output, shape index: {}]  }
   0x1   :  { %12 = vsyncpa [#allocation3 + $0x1], 0  ;;  %s586_s18 = smov 0   ;;  %s588_s19 = smov 0  }
   0x2   :  { %s590_s20 = smov 0   ;;  %s592_s21 = smov 0  }
   0x3 LB: > { %s607_s22 = sadd.s32 4294967295, %s551_s21   ;;  %s423_s23 = sadd.s32 4294967294, %s551_s21   ;;  %s551_s21 = sphi %s592_s21, %s712_s21   ;;  %s547_s20 = sphi %s590_s20, %s711_s20   ;;  %s543_s19 = sphi %s588_s19, %s710_s19   ;;  %s539_s18 = sphi %s586_s18, %s709_s18  }
   0x4   : > { %s611_s24 = sadd.s32 1, %s551_s21   ;;  %s140_s25 = sadd.s32 1, %s547_s20 }
   0x5   : > { %s137_s26 = ssub.s32 %s551_s21, %s611_s24  ;;  %p150_p0 = scmp.ne.s32.totalorder %s547_s20, %s543_s19 }
   0x6   : > { %p138_p1 = scmp.eq.s32.totalorder %s137_s26, 0  ;;  %p151_p2 = scmp.eq.s32.totalorder %s607_s22, 1 }
   0x7   : > { %p156_p3 = scmp.ne.s32.totalorder %s543_s19, %s539_s18  ;;  %p157_p4 = scmp.eq.s32.totalorder %s423_s23, 1 }
   0x8   : > { %s622_s27 = scalar_select %p138_p1, %s547_s20, %s140_s25  }
   0x9   : > { %p624_p5 = por %p151_p2, %p150_p0  ;;  %p628_p6 = por %p157_p4, %p156_p3 }
   0xa   : > { %p426_p7 = scmp.ge.s32.totalorder %s551_s21, 1  ;;  %p198_p8 = scmp.lt.s32.totalorder %s551_s21, 3 }
   0xc   : > { %p199_p9 = pnand %p426_p7, %p198_p8 }
   0xd   : > { %p229_p10 = scmp.lt.s32.totalorder (!%p199_p9), %s607_s22, 1  ;;  %s226_s13 = sand.u32 (!%p199_p9), 1, %s543_s19  }
   0xe   : > { %202 = sbr.rel (%p199_p9) target bundleno = 286 (0x11e), region = 40  ;;  %s427_s16 = sshll.u32 (!%p199_p9), %s226_s13, 3 }
   0xf   : > { %s436_s17 = sshll.u32 (!%p199_p9), %s607_s22, 3  ;;  %s228_s30 = scalar_lea.vmem (!%p199_p9), [#allocation2], %s427_s16 }
  0x10   : > { %s347_s26 = scalar_lea.hbm (!%p199_p9), %s706_s5, %s436_s17  ;;  %s349_s6 = sshll.u32 (!%p199_p9), %s228_s30, 4  ;;  %s350_s6 = int_to_ptr.vmem [resolvable:$true] %s349_s6 }
  0x11   : > { %s351_s7 = sshll.u32 (!%p199_p9), %s347_s26, 4  ;;  %s509_s12 = scalar_lea.hbm (!%p199_p9), %s706_s5, 16  ;;  %s352_s7 = int_to_ptr.hbm [resolvable:$true] %s351_s7 }
  0x13   : > { %v260_v0 = vld [vmem:[%s704_s3 + $0x28] sm:$0x3f]  ;;  %vm265_vm0 = vcmask 1045504   ;;  %v259_v1 = vld [vmem:[%s704_s3 + $0x20] sm:$0xff]  ;;  %v553_v2 = vmov 0   ;;  %vm293_vm1 = vcmask 1043456   ;;  %v243_v15 = vlaneseq }
  0x14   : > { %486 = vset.pattern.permute.xlu0 %v553_v2  ;;  %431 = vmatpush.msk.msra.mxu0 %vm265_vm0, %v260_v0  ;;  %s230_s9 = scalar_select %p229_p10, %s607_s22, 1  ;;  %v258_v3 = vld [vmem:[%s704_s3 + $0x18] sm:$0xff]  ;;  %v252_v4 = vld [vmem:[%s703_s2 + $0x8] sm:$0xf]  ;;  %v257_v5 = vld [vmem:[%s704_s3 + $0x10] sm:$0xff]  ;;  %vm261_vm6 = vcmask 375808  }
  0x15   : > { %433 = vmatpush.msk.msra.mxu1 %vm293_vm1, %v252_v4  ;;  %v256_v7 = vld [vmem:[%s704_s3 + $0x8] sm:$0xff]  ;;  %v244_v16 = vand.u32 127, %v243_v15  ;;  %v255_v17 = vld [vmem:[%s704_s3] sm:$0xff]  ;;  %v554_v20 = vmov 1   ;;  %vm289_vm7 = vcmask 97280   ;;  %v555_v22 = vmov 0.0  }
  0x16   : > { %280 = vmatpush.msra.mxu0 %v259_v1  ;;  %s428_s14 = sshll.u32 %s230_s9, 3  ;;  %v251_v18 = vld [vmem:[%s703_s2] sm:$0xff]  ;;  %487 = vset.pattern.permute.xlu1 %v554_v20  ;;  %vm334_vm9 = vcmask 261120   ;;  %s337_s22 = scalar_lea.sflag [#allocation3], %s226_s13 }
  0x17   : > { %s232_s25 = scalar_lea.vmem %s701_s0, %s428_s14  ;;  %s236_s8 = scalar_lea.vmem %s702_s1, %s428_s14  ;;  %vm253_vm5 = vcmp.eq.s32.totalorder %v244_v16, 0  ;;  %312 = vmatpush.msra.mxu1 %v251_v18  ;;  %v318_v24 = vld [vmem:[%s705_s4] sm:$0x3] }
  0x18   : > { %281 = vmatpush.msra.mxu0 %v258_v3  ;;  %v237_v6 = vld [vmem:[%s232_s25] sm:$0xff]  ;;  %v324_v25 = vperm.slane %v318_v24, 0  ;;  %v331_v27 = vperm.slane %v318_v24, 1 }
  0x19   : > { %vm439_vm2 = vcmp.lt.s32.totalorder %v237_v6, 0  ;;  %v440_v8 = vceil.f32 %v237_v6  ;;  %v441_v9 = vfloor.f32 %v237_v6  ;;  %v317_v14 = vld [vmem:[%s236_s8] sm:$0xff]  ;;  %v254_v19 = vsel %vm253_vm5, 0.0, %v237_v6  ;;  %s503_s8 = sshra.s32 %s352_s7, 4  ;;  %s504_s8 = int_to_ptr.hbm [resolvable:$true] %s503_s8 }
  0x1a   : > { %282 = vmatpush.msra.mxu0 %v257_v5  ;;  %328 = vperm.xlu1 %487, %v317_v14   ;;  %s505_s9 = scalar_lea.hbm %s504_s8, 8  ;;  %p510_p0 = scmp.lt.s32.totalorder %s504_s8, %s706_s5 }
  0x1b   : > { %v442_v10 = vsel %vm439_vm2, %v440_v8, %v441_v9  ;;  %p506_p11 = scmp.ne.s32.totalorder %s504_s8, %s505_s9  ;;  %p511_p1 = scmp.lt.s32.totalorder %s509_s12, %s505_s9 }
  0x1c   : > { %283 = vmatpush.msra.mxu0 %v256_v7  ;;  %v443_v11 = vcvt.f32.s32 %v442_v10 }
  0x1d   : > { %p507_p12 = pnand %p506_p11, %p624_p5  ;;  %p512_p2 = por %p511_p1, %p510_p0 }
  0x1e   : > { %vm239_vm3 = vcmp.gt.s32.totalorder %v443_v11, 0  ;;  %284 = vmatpush.msra.mxu0 %v255_v17 }
  0x1f   : > { %v240_v12 = vsel %vm239_vm3, %v443_v11, 0  ;;  %432 = vmatmul.msk.f32.vlgmr.msra.gmra.mxu0 %vm261_vm6, %v254_v19  ;;  %p508_p13 = pneg %p507_p12 }
  0x20   : > { %vm241_vm4 = vcmp.lt.s32.totalorder %v240_v12, 11 }
  0x21   : > { %v242_v13 = vsel %vm241_vm4, %v240_v12, 11  ;;  %p513_p3 = pnand %p512_p2, %p508_p13 }
  0x22   : > { %246 = vperm.xlu0 %486, %v242_v13  }
  0x2a   : > { %321 = vperm.xlu0 %486, %v317_v14  }
  0x32   : > { %488 = vset.pattern.permute.xlu0 %v554_v20 }
  0x8c   : > { %v329_v29 = vpop.permute.xlu1 %328 }
  0x8d   : > { %v332_v33 = vmul.f32 %v331_v27, %v329_v29 }
  0x94   : > { %v247_v21 = vpop.permute.xlu0 %246 }
  0x95   : > { %vm248_vm8 = vcmp.eq.s32.totalorder %v247_v21, %v244_v16 }
  0x96   : > { %v430_v23 = vsel %vm248_vm8, 1.0, %v555_v22 }
  0x97   : > { %434 = vmatmul.msk.f32.vlgmr.msra.gmra.mxu1 %vm289_vm7, %v430_v23 }
  0x9c   : > { %v322_v26 = vpop.permute.xlu0 %321  ;;  %v286_v28 = vpop.f32.mrf.mxu0 }
  0x9d   : > { %v325_v31 = vmul.f32 %v324_v25, %v322_v26 }
 0x114   : > { %v314_v30 = vpop.f32.mrf.mxu1 }
 0x115   : > { %v315_v32 = vadd.f32 %v314_v30, %v286_v28 }
 0x117   : > { %v326_v34 = vadd.f32 %v325_v31, %v315_v32 }
 0x119   : > { %v333_v35 = vadd.f32 %v332_v33, %v326_v34 }
 0x11b   : > { %335 = vst.msk [vmem:[%s228_s30] sm:$0xff] %vm334_vm9, %v333_v35 }
 0x11c   : > { %516 = shalt.err (!%p513_p3)
}
 0x11d   : > { %444 = dma.vmem_to_hbm [thread:$0]  (%p624_p5), %s350_s6, 128, %s352_s7, %s337_s22  }
 0x11e PF: > { %p450_p4 = scmp.ge.s32.totalorder %s551_s21, 2  ;;  %s363_s13 = sand.u32 1, %s539_s18  }
 0x11f   : > { %s364_s16 = scalar_lea.sflag [#allocation3], %s363_s13 }
 0x120   : > { %p447_p7 = pnand %p450_p4, %p628_p6 }
 0x122   : > { %p448_p8 = pneg %p447_p7 }
 0x124   : > { %534 = dma.done.wait (%p448_p8), %s364_s16, 128  }
 0x125   : > { %536 = vsyncadd (%p448_p8), %s364_s16, 4294967168  ;;  %p15_p9 = scmp.ge.s32.totalorder %s611_s24, 4   ;;  %s709_s18 = smov %s543_s19 }
 0x126   : > { %s710_s19 = smov %s547_s20  ;;  %s711_s20 = smov %s622_s27 }
 0x127   : > { %s712_s21 = smov %s611_s24  ;;  %17 = sbr.rel (!%p15_p9) target bundleno = 3 (0x3), region = 78 }
 0x12c   :  { %370 = vsyncpa [#allocation3], 1 }
 0x12d   :  { %372 = vsyncpa [#allocation3 + $0x1], 1 }

</bundles_post_ra>
